<compile_context>
chip_gen: v6e
topology: v6e:2x2x1
jax: 0.10.0
libtpu: 0.0.40
codegen_flags: <defaults>
</compile_context>

<pallas_src>
import jax
import jax.numpy as jnp
from jax.experimental import pallas as pl
from jax.experimental.pallas import tpu as pltpu

IN_FEATURES = 512
OUT_FEATURES = 2
NEG_SLOPE = 0.01


def discriminator_kernel(x_ref, w_ref, b_ref, o_ref):
    x = x_ref[...]          # (TB, 512)
    w = w_ref[...]          # (512, 2)   resident across grid steps
    b = b_ref[...]          # (2, 1)     resident across grid steps

    # MXU matmul in the native (streaming-LHS) orientation; result is tiny.
    logits = jnp.dot(x, w, preferred_element_type=jnp.float32)     # (TB, 2)

    # Single small relayout to lane-dense (2, TB): batch lives on the lane axis
    # for everything that follows (VPU/EUP ops and the stores).
    lt = logits.T + b                                               # (2, TB)

    # LeakyReLU(0.01)  (x >= 0 matches PyTorch semantics)
    act = jnp.where(lt >= 0, lt, NEG_SLOPE * lt)                    # (2, TB)

    # 2-class softmax == sigmoid of the column difference (exact, stable):
    #   p0 = sigmoid(a0 - a1), p1 = 1 - p0
    a0 = act[0:1, :]                                                # (1, TB)
    a1 = act[1:2, :]                                                # (1, TB)
    d = a0 - a1
    ena = jnp.exp(-jnp.abs(d))                                      # in (0, 1]
    p_big = 1.0 / (1.0 + ena)                                       # prob of larger logit
    p0 = jnp.where(d >= 0, p_big, 1.0 - p_big)                      # P(class 0)

    # Two lane-dense row stores (no iota/where interleave, no masked 2-wide vst).
    o_ref[0:1, :] = p0.astype(o_ref.dtype)
    o_ref[1:2, :] = (1.0 - p0).astype(o_ref.dtype)


def discriminator_forward(img, weight, bias, *, tb=2048):
    """img: (B, 512); weight: (512, 2); bias: (2,)  ->  (B, 2) f32 probabilities.

    tb: batch tile (rows per grid step). 2048 fits scoped VMEM on v5e/v6e/v7x;
    v6e/v7x can use 4096.  bf16 `img` is also accepted (f32 MXU accumulate).
    """
    B = img.shape[0]
    bias_col = bias.reshape(OUT_FEATURES, 1)

    if B <= tb:
        # Single block equal to the full arrays (no (8,128)-divisibility issue,
        # works for any B).
        tb_eff = B
    else:
        # Multi-block: tile must be a multiple of 128 so the transposed output
        # block (2, tb_eff) is lane-aligned; ragged edge handled by Pallas.
        tb_eff = max(128, (tb // 128) * 128)
    grid_len = pl.cdiv(B, tb_eff)

    itemsize = jnp.dtype(img.dtype).itemsize
    cost = pl.CostEstimate(
        flops=2 * B * IN_FEATURES * OUT_FEATURES,
        transcendentals=B,
        bytes_accessed=(B * IN_FEATURES * itemsize
                        + IN_FEATURES * OUT_FEATURES * 4
                        + OUT_FEATURES * 4
                        + OUT_FEATURES * B * 4),
    )

    out_t = pl.pallas_call(
        discriminator_kernel,
        out_shape=jax.ShapeDtypeStruct((OUT_FEATURES, B), jnp.float32),
        grid=(grid_len,),
        in_specs=[
            pl.BlockSpec((tb_eff, IN_FEATURES), lambda i: (i, 0)),
            pl.BlockSpec((IN_FEATURES, OUT_FEATURES), lambda i: (0, 0)),
            pl.BlockSpec((OUT_FEATURES, 1), lambda i: (0, 0)),
        ],
        out_specs=pl.BlockSpec((OUT_FEATURES, tb_eff), lambda i: (0, i)),
        compiler_params=pltpu.CompilerParams(
            dimension_semantics=("parallel",)),
        cost_estimate=cost,
    )(img, weight, bias_col)

    # Tiny (2, B) -> (B, 2) transpose in the wrapper.
    return out_t.T


def init_params(key):
    # Deterministic init mimicking nn.Linear's uniform(-1/sqrt(fan_in), 1/sqrt(fan_in)).
    kw, kb = jax.random.split(key)
    bound = 1.0 / jnp.sqrt(float(IN_FEATURES))
    weight = jax.random.uniform(
        kw, (IN_FEATURES, OUT_FEATURES), jnp.float32, minval=-bound, maxval=bound)
    bias = jax.random.uniform(
        kb, (OUT_FEATURES,), jnp.float32, minval=-bound, maxval=bound)
    return weight, bias


def reference_forward(img, weight, bias):
    logits = img @ weight + bias
    act = jnp.where(logits >= 0, logits, NEG_SLOPE * logits)
    return jax.nn.softmax(act, axis=1)


if __name__ == "__main__":
    key = jax.random.PRNGKey(0)
    kx, kp = jax.random.split(key)
    weight, bias = init_params(kp)

    # Small single-block batch.
    B = 8
    img = jax.random.normal(kx, (B, IN_FEATURES), jnp.float32)
    out = jax.block_until_ready(discriminator_forward(img, weight, bias))
    ref = reference_forward(img, weight, bias)
    assert out.shape == (B, OUT_FEATURES)
    assert jnp.allclose(out, ref, atol=1e-5, rtol=1e-5), "mismatch vs reference (B=8)"
    assert jnp.allclose(jnp.sum(out, axis=1), jnp.ones((B,)), atol=1e-5)

    # Multi-block with a ragged edge block (no wrapper-side padding copy).
    B2 = 300
    img2 = jax.random.normal(kx, (B2, IN_FEATURES), jnp.float32)
    out2 = jax.block_until_ready(discriminator_forward(img2, weight, bias, tb=128))
    ref2 = reference_forward(img2, weight, bias)
    assert out2.shape == (B2, OUT_FEATURES)
    assert jnp.allclose(out2, ref2, atol=1e-5, rtol=1e-5), "mismatch vs reference (B=300)"
    assert jnp.allclose(jnp.sum(out2, axis=1), jnp.ones((B2,)), atol=1e-5)

    print("KERNEL_OK")
</pallas_src>

<mosaic_0001>
module attributes {stable_mosaic.version = 11 : i64} {
  func.func @discriminator_kernel(%arg0: i32, %arg1: memref<8x512xf32, #tpu.memory_space<vmem>>, %arg2: memref<512x2xf32, #tpu.memory_space<vmem>>, %arg3: memref<2x1xf32, #tpu.memory_space<vmem>>, %arg4: memref<2x8xf32, #tpu.memory_space<vmem>>) attributes {dimension_semantics = [#tpu.dimension_semantics<parallel>], iteration_bounds = array<i64: 1>, scalar_prefetch = 0 : i64, scratch_operands = 0 : i64, tpu.core_type = #tpu.core_type<tc>, window_params = [{transform_indices = @transform_0, window_bounds = array<i64: 8, 512>}, {pipeline_mode = #tpu.pipeline_mode<synchronous>, transform_indices = @transform_1, window_bounds = array<i64: 512, 2>}, {pipeline_mode = #tpu.pipeline_mode<synchronous>, transform_indices = @transform_2, window_bounds = array<i64: 2, 1>}, {transform_indices = @transform_3, window_bounds = array<i64: 2, 8>}]} {
    %c0 = arith.constant 0 : index
    %c0_0 = arith.constant 0 : index
    %0 = vector.load %arg1[%c0, %c0_0] : memref<8x512xf32, #tpu.memory_space<vmem>>, vector<8x512xf32>
    %c0_1 = arith.constant 0 : index
    %c0_2 = arith.constant 0 : index
    %1 = vector.load %arg2[%c0_1, %c0_2] : memref<512x2xf32, #tpu.memory_space<vmem>>, vector<512x2xf32>
    %c0_3 = arith.constant 0 : index
    %c0_4 = arith.constant 0 : index
    %2 = vector.load %arg3[%c0_3, %c0_4] : memref<2x1xf32, #tpu.memory_space<vmem>>, vector<2x1xf32>
    %cst = arith.constant dense<0.000000e+00> : vector<8x2xf32>
    %3 = tpu.matmul %0, %1, %cst {dimension_numbers = #tpu.dot_dimension_numbers<[1], [0], [0], [1], [0, 0, 1, 1], [], []>} : vector<8x512xf32>, vector<512x2xf32>, vector<8x2xf32> -> vector<8x2xf32>
    %4 = tpu.transpose %3, [1, 0] : vector<8x2xf32> -> vector<2x8xf32>
    %5 = vector.broadcast %2 : vector<2x1xf32> to vector<2x8xf32>
    %6 = arith.addf %4, %5 : vector<2x8xf32>
    %cst_5 = arith.constant 0.000000e+00 : f32
    %7 = vector.broadcast %cst_5 : f32 to vector<2x8xf32>
    %8 = arith.cmpf oge, %6, %7 : vector<2x8xf32>
    %cst_6 = arith.constant 0.00999999977 : f32
    %9 = vector.broadcast %cst_6 : f32 to vector<2x8xf32>
    %10 = arith.mulf %9, %6 : vector<2x8xf32>
    %11 = arith.select %8, %6, %10 : vector<2x8xi1>, vector<2x8xf32>
    %12 = vector.extract_strided_slice %11 {offsets = [0, 0], sizes = [1, 8], strides = [1, 1]} : vector<2x8xf32> to vector<1x8xf32>
    %13 = vector.extract_strided_slice %11 {offsets = [1, 0], sizes = [1, 8], strides = [1, 1]} : vector<2x8xf32> to vector<1x8xf32>
    %14 = arith.subf %12, %13 : vector<1x8xf32>
    %15 = math.absf %14 : vector<1x8xf32>
    %cst_7 = arith.constant 0.000000e+00 : f32
    %16 = vector.broadcast %cst_7 : f32 to vector<1x8xf32>
    %17 = arith.subf %16, %15 : vector<1x8xf32>
    %18 = math.exp %17 : vector<1x8xf32>
    %cst_8 = arith.constant 1.000000e+00 : f32
    %19 = vector.broadcast %cst_8 : f32 to vector<1x8xf32>
    %20 = arith.addf %19, %18 : vector<1x8xf32>
    %cst_9 = arith.constant 1.000000e+00 : f32
    %21 = vector.broadcast %cst_9 : f32 to vector<1x8xf32>
    %22 = arith.divf %21, %20 : vector<1x8xf32>
    %cst_10 = arith.constant 0.000000e+00 : f32
    %23 = vector.broadcast %cst_10 : f32 to vector<1x8xf32>
    %24 = arith.cmpf oge, %14, %23 : vector<1x8xf32>
    %cst_11 = arith.constant 1.000000e+00 : f32
    %25 = vector.broadcast %cst_11 : f32 to vector<1x8xf32>
    %26 = arith.subf %25, %22 : vector<1x8xf32>
    %27 = arith.select %24, %22, %26 : vector<1x8xi1>, vector<1x8xf32>
    %c0_12 = arith.constant 0 : index
    %c0_13 = arith.constant 0 : index
    %28 = vector.load %arg4[%c0_12, %c0_13] : memref<2x8xf32, #tpu.memory_space<vmem>>, vector<1x8xf32>
    tpu.vector_store %arg4[%c0_12, %c0_13], %27 {strides = array<i32>} : memref<2x8xf32, #tpu.memory_space<vmem>>, vector<1x8xf32>,
    %cst_14 = arith.constant 1.000000e+00 : f32
    %29 = vector.broadcast %cst_14 : f32 to vector<1x8xf32>
    %30 = arith.subf %29, %27 : vector<1x8xf32>
    %c1 = arith.constant 1 : index
    %c0_15 = arith.constant 0 : index
    %31 = vector.load %arg4[%c1, %c0_15] : memref<2x8xf32, #tpu.memory_space<vmem>>, vector<1x8xf32>
    tpu.vector_store %arg4[%c1, %c0_15], %30 {strides = array<i32>} : memref<2x8xf32, #tpu.memory_space<vmem>>, vector<1x8xf32>,
    return
  }
  func.func @transform_0(%arg0: i32) -> (i32, i32) {
    %c0_i32 = arith.constant 0 : i32
    %c0_i32_0 = arith.constant 0 : i32
    return %arg0, %c0_i32 : i32, i32
  }
  func.func @transform_1(%arg0: i32) -> (i32, i32) {
    %c0_i32 = arith.constant 0 : i32
    %c0_i32_0 = arith.constant 0 : i32
    %c0_i32_1 = arith.constant 0 : i32
    return %c0_i32, %c0_i32_0 : i32, i32
  }
  func.func @transform_2(%arg0: i32) -> (i32, i32) {
    %c0_i32 = arith.constant 0 : i32
    %c0_i32_0 = arith.constant 0 : i32
    %c0_i32_1 = arith.constant 0 : i32
    return %c0_i32, %c0_i32_0 : i32, i32
  }
  func.func @transform_3(%arg0: i32) -> (i32, i32) {
    %c0_i32 = arith.constant 0 : i32
    %c0_i32_0 = arith.constant 0 : i32
    return %c0_i32, %arg0 : i32, i32
  }
}

</mosaic_0001>

<bundles_post_ra>
// kernel: tpu_custom_call.1
= control target key start
LH: loop header
LB: loop body
LE: loop exit
PB: predicated region body
PF: predicated region fallthrough
CT: control target
= control target key end

     0   :  { %s629_s0 = inlined_call_operand.vmem [shape: f32[8,512], index: 0, kind: input, shape index: {}]   ;;  %s630_s1 = inlined_call_operand.vmem [shape: f32[512,2], index: 1, kind: input, shape index: {}]   ;;  %s631_s2 = inlined_call_operand.vmem [shape: f32[2,1], index: 2, kind: input, shape index: {}]   ;;  %s632_s3 = inlined_call_operand.hbm [shape: f32[2,8], index: 3, kind: output, shape index: {}]  }
   0x1   :  { %v50_v0 = vld [vmem:[%s630_s1 + $0xf8] sm:$0xff]  ;;  %v49_v4 = vld [vmem:[%s630_s1 + $0xf0] sm:$0xff]  ;;  %v48_v8 = vld [vmem:[%s630_s1 + $0xe8] sm:$0xff] }
   0x2   :  { %v82_v1 = vld [vmem:[%s630_s1 + $0x1f8] sm:$0xff]  ;;  %297 = vmatprep.subr.mxu0 %v50_v0  ;;  %v81_v5 = vld [vmem:[%s630_s1 + $0x1f0] sm:$0xff]  ;;  %v80_v9 = vld [vmem:[%s630_s1 + $0x1e8] sm:$0xff] }
   0x3   :  { %v34_v2 = vld [vmem:[%s630_s1 + $0x78] sm:$0xff]  ;;  %332 = vmatprep.subr.mxu1 %v82_v1  ;;  %v33_v6 = vld [vmem:[%s630_s1 + $0x70] sm:$0xff]  ;;  %v32_v10 = vld [vmem:[%s630_s1 + $0x68] sm:$0xff] }
   0x4   :  { %v66_v3 = vld [vmem:[%s630_s1 + $0x178] sm:$0xff]  ;;  %298 = vmatpush3.msra.mxu0 %v34_v2  ;;  %v65_v7 = vld [vmem:[%s630_s1 + $0x170] sm:$0xff]  ;;  %v64_v11 = vld [vmem:[%s630_s1 + $0x168] sm:$0xff] }
   0x5   :  { %333 = vmatpush3.msra.mxu1 %v66_v3  ;;  %299 = vmatprep.subr.mxu0 %v49_v4  ;;  %v47_v12 = vld [vmem:[%s630_s1 + $0xe0] sm:$0xff]  ;;  %v46_v16 = vld [vmem:[%s630_s1 + $0xd8] sm:$0xff]  ;;  %v45_v20 = vld [vmem:[%s630_s1 + $0xd0] sm:$0xff] }
   0x6   :  { %334 = vmatprep.subr.mxu1 %v81_v5  ;;  %300 = vmatpush3.msra.mxu0 %v33_v6  ;;  %v79_v13 = vld [vmem:[%s630_s1 + $0x1e0] sm:$0xff]  ;;  %v78_v17 = vld [vmem:[%s630_s1 + $0x1d8] sm:$0xff]  ;;  %v77_v21 = vld [vmem:[%s630_s1 + $0x1d0] sm:$0xff] }
   0x7   :  { %335 = vmatpush3.msra.mxu1 %v65_v7  ;;  %301 = vmatprep.subr.mxu0 %v48_v8  ;;  %v31_v14 = vld [vmem:[%s630_s1 + $0x60] sm:$0xff]  ;;  %v30_v18 = vld [vmem:[%s630_s1 + $0x58] sm:$0xff]  ;;  %v29_v22 = vld [vmem:[%s630_s1 + $0x50] sm:$0xff] }
   0x8   :  { %336 = vmatprep.subr.mxu1 %v80_v9  ;;  %v63_v15 = vld [vmem:[%s630_s1 + $0x160] sm:$0xff]  ;;  %302 = vmatpush3.msra.mxu0 %v32_v10  ;;  %v62_v19 = vld [vmem:[%s630_s1 + $0x158] sm:$0xff]  ;;  %v61_v23 = vld [vmem:[%s630_s1 + $0x150] sm:$0xff] }
   0x9   :  { %337 = vmatpush3.msra.mxu1 %v64_v11  ;;  %303 = vmatprep.subr.mxu0 %v47_v12  ;;  %v44_v24 = vld [vmem:[%s630_s1 + $0xc8] sm:$0xff]  ;;  %v43_v28 = vld [vmem:[%s630_s1 + $0xc0] sm:$0xff]  ;;  %v42_v32 = vld [vmem:[%s630_s1 + $0xb8] sm:$0xff] }
   0xa   :  { %338 = vmatprep.subr.mxu1 %v79_v13  ;;  %304 = vmatpush3.msra.mxu0 %v31_v14  ;;  %v76_v25 = vld [vmem:[%s630_s1 + $0x1c8] sm:$0xff]  ;;  %v75_v29 = vld [vmem:[%s630_s1 + $0x1c0] sm:$0xff]  ;;  %v74_v33 = vld [vmem:[%s630_s1 + $0x1b8] sm:$0xff] }
   0xb   :  { %339 = vmatpush3.msra.mxu1 %v63_v15  ;;  %305 = vmatprep.subr.mxu0 %v46_v16  ;;  %v28_v26 = vld [vmem:[%s630_s1 + $0x48] sm:$0xff]  ;;  %v27_v30 = vld [vmem:[%s630_s1 + $0x40] sm:$0xff]  ;;  %v26_v34 = vld [vmem:[%s630_s1 + $0x38] sm:$0xff] }
   0xc   :  { %340 = vmatprep.subr.mxu1 %v78_v17  ;;  %306 = vmatpush3.msra.mxu0 %v30_v18  ;;  %v60_v27 = vld [vmem:[%s630_s1 + $0x148] sm:$0xff]  ;;  %v59_v31 = vld [vmem:[%s630_s1 + $0x140] sm:$0xff]  ;;  %v58_v35 = vld [vmem:[%s630_s1 + $0x138] sm:$0xff] }
   0xd   :  { %341 = vmatpush3.msra.mxu1 %v62_v19  ;;  %307 = vmatprep.subr.mxu0 %v45_v20  ;;  %v41_v36 = vld [vmem:[%s630_s1 + $0xb0] sm:$0xff]  ;;  %v40_v40 = vld [vmem:[%s630_s1 + $0xa8] sm:$0xff]  ;;  %v39_v44 = vld [vmem:[%s630_s1 + $0xa0] sm:$0xff] }
   0xe   :  { %342 = vmatprep.subr.mxu1 %v77_v21  ;;  %308 = vmatpush3.msra.mxu0 %v29_v22  ;;  %v73_v37 = vld [vmem:[%s630_s1 + $0x1b0] sm:$0xff]  ;;  %v72_v41 = vld [vmem:[%s630_s1 + $0x1a8] sm:$0xff]  ;;  %v71_v45 = vld [vmem:[%s630_s1 + $0x1a0] sm:$0xff] }
   0xf   :  { %343 = vmatpush3.msra.mxu1 %v61_v23  ;;  %309 = vmatprep.subr.mxu0 %v44_v24  ;;  %v25_v38 = vld [vmem:[%s630_s1 + $0x30] sm:$0xff]  ;;  %v24_v42 = vld [vmem:[%s630_s1 + $0x28] sm:$0xff]  ;;  %v23_v46 = vld [vmem:[%s630_s1 + $0x20] sm:$0xff] }
  0x10   :  { %344 = vmatprep.subr.mxu1 %v76_v25  ;;  %310 = vmatpush3.msra.mxu0 %v28_v26  ;;  %v57_v39 = vld [vmem:[%s630_s1 + $0x130] sm:$0xff]  ;;  %v56_v43 = vld [vmem:[%s630_s1 + $0x128] sm:$0xff]  ;;  %v55_v47 = vld [vmem:[%s630_s1 + $0x120] sm:$0xff] }
  0x11   :  { %345 = vmatpush3.msra.mxu1 %v60_v27  ;;  %311 = vmatprep.subr.mxu0 %v43_v28  ;;  %v38_v48 = vld [vmem:[%s630_s1 + $0x98] sm:$0xff] }
  0x12   :  { %346 = vmatprep.subr.mxu1 %v75_v29  ;;  %312 = vmatpush3.msra.mxu0 %v27_v30  ;;  %v70_v49 = vld [vmem:[%s630_s1 + $0x198] sm:$0xff] }
  0x13   :  { %347 = vmatpush3.msra.mxu1 %v59_v31  ;;  %313 = vmatprep.subr.mxu0 %v42_v32  ;;  %v22_v50 = vld [vmem:[%s630_s1 + $0x18] sm:$0xff] }
  0x14   :  { %348 = vmatprep.subr.mxu1 %v74_v33  ;;  %314 = vmatpush3.msra.mxu0 %v26_v34  ;;  %v54_v51 = vld [vmem:[%s630_s1 + $0x118] sm:$0xff] }
  0x15   :  { %349 = vmatpush3.msra.mxu1 %v58_v35  ;;  %315 = vmatprep.subr.mxu0 %v41_v36 }
  0x16   :  { %350 = vmatprep.subr.mxu1 %v73_v37  ;;  %316 = vmatpush3.msra.mxu0 %v25_v38 }
  0x17   :  { %351 = vmatpush3.msra.mxu1 %v57_v39  ;;  %317 = vmatprep.subr.mxu0 %v40_v40 }
  0x18   :  { %352 = vmatprep.subr.mxu1 %v72_v41  ;;  %318 = vmatpush3.msra.mxu0 %v24_v42 }
  0x19   :  { %353 = vmatpush3.msra.mxu1 %v56_v43  ;;  %319 = vmatprep.subr.mxu0 %v39_v44 }
  0x1a   :  { %354 = vmatprep.subr.mxu1 %v71_v45 }
  0x1b   :  { %8 = vsyncpa [#allocation3], 0  ;;  %320 = vmatpush3.msra.mxu0 %v23_v46  ;;  %355 = vmatpush3.msra.mxu1 %v55_v47  ;;  %v37_v52 = vld [vmem:[%s630_s1 + $0x90] sm:$0xff]  ;;  %v36_v56 = vld [vmem:[%s630_s1 + $0x88] sm:$0xff]  ;;  %v397_v5 = vmov 0   ;;  %vm279_vm1 = vcmask 57344  }
  0x1c   :  { %v69_v53 = vld [vmem:[%s630_s1 + $0x190] sm:$0xff]  ;;  %321 = vmatprep.subr.mxu0 %v38_v48  ;;  %356 = vmatprep.subr.mxu1 %v70_v49  ;;  %v68_v57 = vld [vmem:[%s630_s1 + $0x188] sm:$0xff]  ;;  %v35_v60 = vld [vmem:[%s630_s1 + $0x80] sm:$0xff] }
  0x1d   :  { %v21_v54 = vld [vmem:[%s630_s1 + $0x10] sm:$0xff]  ;;  %322 = vmatpush3.msra.mxu0 %v22_v50  ;;  %357 = vmatpush3.msra.mxu1 %v54_v51  ;;  %v20_v58 = vld [vmem:[%s630_s1 + $0x8] sm:$0xff]  ;;  %v67_v61 = vld [vmem:[%s630_s1 + $0x180] sm:$0xff] }
  0x1e   :  { %v53_v55 = vld [vmem:[%s630_s1 + $0x110] sm:$0xff]  ;;  %323 = vmatprep.subr.mxu0 %v37_v52  ;;  %358 = vmatprep.subr.mxu1 %v69_v53  ;;  %v52_v59 = vld [vmem:[%s630_s1 + $0x108] sm:$0xff]  ;;  %v19_v62 = vld [vmem:[%s630_s1] sm:$0xff] }
  0x1f   :  { %324 = vmatpush3.msra.mxu0 %v21_v54  ;;  %359 = vmatpush3.msra.mxu1 %v53_v55  ;;  %v16_v63 = vld [vmem:[%s629_s0 + $0x8] sm:$0xff]  ;;  %v51_v0 = vld [vmem:[%s630_s1 + $0x100] sm:$0xff]  ;;  %v18_v1 = vld [vmem:[%s629_s0 + $0x18] sm:$0xff] }
  0x20   :  { %325 = vmatprep.subr.mxu0 %v36_v56  ;;  %360 = vmatprep.subr.mxu1 %v68_v57  ;;  %v15_v2 = vld [vmem:[%s629_s0] sm:$0xff]  ;;  %v17_v3 = vld [vmem:[%s629_s0 + $0x10] sm:$0xff]  ;;  %s398_s0 = smov [#allocation2]  }
  0x21   :  { %326 = vmatpush3.msra.mxu0 %v20_v58  ;;  %361 = vmatpush3.msra.mxu1 %v52_v59  ;;  %v83_v4 = vld [vmem:[%s631_s2] sm:$0x3]  ;;  %s289_s2 = sshll.u32 %s398_s0, 4  ;;  %s290_s2 = int_to_ptr.vmem [resolvable:$true] %s289_s2 }
  0x22   :  { %327 = vmatprep.subr.mxu0 %v35_v60  ;;  %362 = vmatprep.subr.mxu1 %v67_v61  ;;  %s375_s14 = scalar_lea.vmem %s290_s2, 32  ;;  %p380_p1 = scmp.lt.s32.totalorder %s290_s2, %s290_s2 }
  0x23   :  { %328 = vmatpush3.msra.mxu0 %v19_v62  ;;  %148 = vmatprep.mubr.f32.mxu0 %v16_v63  ;;  %p376_p0 = scmp.ne.s32.totalorder %s290_s2, %s375_s14  ;;  %p381_p2 = scmp.lt.s32.totalorder %s375_s14, %s375_s14 }
  0x24   :  { %363 = vmatpush3.msra.mxu1 %v51_v0  ;;  %218 = vmatprep.mubr.f32.mxu1 %v18_v1 }
  0x25   :  { %149 = vmatmul.mubr.f32.vlgmr.msra.gmra.mxu0 %v15_v2  ;;  %219 = vmatmul.mubr.f32.vlgmr.msra.gmra.mxu1 %v17_v3  ;;  %p382_p3 = por %p381_p2, %p380_p1 }
  0x26   :  { %370 = vset.pattern.permute.xlu0 %v397_v5 }
  0x27   :  { %258 = vperm.xlu0 %370, %v83_v4   ;;  %p383_p4 = pnand %p382_p3, %p376_p0 }
  0xa2   :  { %v259_v13 = vpop.permute.xlu0 %258 }
  0xe5   :  { %v329_v6 = vpop.f32.mrf.mxu0  ;;  %v364_v7 = vpop.f32.mrf.mxu1 }
  0xe7   :  { %v330_v8 = vpop.f32.mrf.mxu0  ;;  %v365_v9 = vpop.f32.mrf.mxu1 }
  0xe8   :  { %v331_v10 = vadd.f32 %v330_v8, %v329_v6  ;;  %v366_v11 = vadd.f32 %v365_v9, %v364_v7 }
  0xea   :  { %v221_v12 = vadd.f32 %v366_v11, %v331_v10 }
  0xec   :  { %224 = vxpose.xlu0.b32.start.end [1/1] (short) (narrow) %v221_v12, 8 }
 0x168   :  { %v240_v14 = vpop.trf.xlu0 }
 0x169   :  { %v261_v15 = vadd.f32 %v259_v13, %v240_v14 }
 0x16b   :  { %vm262_vm0 = vcmp.ge.f32.partialorder %v261_v15, 0.0  ;;  %v263_v16 = vmul.f32 0.01, %v261_v15 }
 0x16d   :  { %v264_v17 = vsel %vm262_vm0, %v261_v15, %v263_v16 }
 0x16e   :  { %v266_v18 = vrot.slane %v264_v17, 1 }
 0x170   :  { %v268_v19 = vsub.f32 %v264_v17, %v266_v18 }
 0x172   :  { %v269_v20 = vand.u32 2147483647, %v268_v19  ;;  %vm276_vm2 = vcmp.ge.f32.partialorder %v268_v19, 0.0 }
 0x174   :  { %v270_v21 = vsub.f32 0.0, %v269_v20 }
 0x176   :  { %v271_v22 = vmul.f32 1.442695, %v270_v21 }
 0x178   :  { %371 = vpow2.f32 %v271_v22 }
 0x185   :  { %v372_v23 = vpop.eup %371 }
 0x186   :  { %v273_v24 = vadd.f32 1.0, %v372_v23 }
 0x188   :  { %373 = vrcp.f32 %v273_v24 }
 0x195   :  { %v374_v25 = vpop.eup %373 }
 0x196   :  { %v277_v26 = vsub.f32 1.0, %v374_v25 }
 0x198   :  { %v278_v27 = vsel %vm276_vm2, %v374_v25, %v277_v26 }
 0x199   :  { %280 = vst.msk [vmem:[#allocation2] sm:$0x1] %vm279_vm1, %v278_v27  ;;  %v281_v28 = vsub.f32 1.0, %v278_v27 }
 0x19b   :  { %282 = vst.msk [vmem:[#allocation2 + $0x1] sm:$0x1] %vm279_vm1, %v281_v28 }
 0x19c   :  { %386 = shalt.err (!%p383_p4)
}
 0x19d   :  { %292 = dma.vmem_to_hbm [thread:$0]  %s290_s2, 32, %s632_s3, [#allocation3]  }
 0x19e   :  { %395 = dma.done.wait [#allocation3], 32  }
 0x19f   :  { %396 = vsyncadd [#allocation3], 4294967264 }
 0x1a0   :  { %296 = vsyncpa [#allocation3], 1 }

</bundles_post_ra>
